<compile_context>
chip_gen: v7x
topology: tpu7x:2x2x1
jax: 0.10.0
libtpu: 0.0.40
codegen_flags: <defaults>
</compile_context>

<pallas_src>
import math
from functools import partial

import jax
import jax.numpy as jnp
from jax import lax
from jax.experimental import pallas as pl
from jax.experimental.pallas import tpu as pltpu


# --------------------------------------------------------------------------- #
# In-kernel helpers
# --------------------------------------------------------------------------- #
_INV_SQRT2 = 1.0 / math.sqrt(2.0)
# Abramowitz & Stegun 7.1.26 rational erf approximation (max abs err ~1.5e-7).
# Matches torch's exact-erf nn.GELU(); only needs exp (EUP) + a few VPU ops.
_ERF_P, _A1, _A2, _A3, _A4, _A5 = (0.3275911, 0.254829592, -0.284496736,
                                   1.421413741, -1.453152027, 1.061405429)


def _erf(x):
    ax = jnp.abs(x)
    t = 1.0 / (1.0 + _ERF_P * ax)
    poly = t * (_A1 + t * (_A2 + t * (_A3 + t * (_A4 + t * _A5))))
    e = 1.0 - poly * jnp.exp(-(ax * ax))
    return jnp.where(x < 0.0, -e, e)


def _gelu(x):
    # torch nn.GELU() default (exact / erf form)
    return 0.5 * x * (1.0 + _erf(x * _INV_SQRT2))


# --------------------------------------------------------------------------- #
# Kernel 1: fused MLP (Linear->GELU->Linear->GELU->Linear) + L2 normalize
#           bf16 operands, f32 accumulation, weights VMEM-resident.
# --------------------------------------------------------------------------- #
def _mlp_norm_kernel(x_ref, w1_ref, b1_ref, w2_ref, b2_ref, w3_ref, b3_ref, z_ref):
    h = jnp.dot(x_ref[...], w1_ref[...], preferred_element_type=jnp.float32) + b1_ref[...]
    h = _gelu(h).astype(jnp.bfloat16)
    h = jnp.dot(h, w2_ref[...], preferred_element_type=jnp.float32) + b2_ref[...]
    h = _gelu(h).astype(jnp.bfloat16)
    z = jnp.dot(h, w3_ref[...], preferred_element_type=jnp.float32) + b3_ref[...]
    # F.normalize(z, p=2, dim=-1): z / max(||z||_2, 1e-12)  (rsqrt -> EUP slot)
    ssq = jnp.sum(z * z, axis=-1, keepdims=True)
    z_ref[...] = (z * lax.rsqrt(jnp.maximum(ssq, 1e-24))).astype(z_ref.dtype)


# --------------------------------------------------------------------------- #
# Kernel 2: weight-normed last layer  out = z @ (g * v / ||v_row||).T
#           v tiled directly as (to, bdim); contraction on its last dim so the
#           MXU does the transpose; per-row scale precomputed in the wrapper.
# --------------------------------------------------------------------------- #
def _wn_last_kernel(z_ref, v_ref, s_ref, o_ref):
    acc = lax.dot_general(z_ref[...], v_ref[...],
                          dimension_numbers=(((1,), (1,)), ((), ())),
                          preferred_element_type=jnp.float32)   # (tb, to)
    o_ref[...] = acc * s_ref[...]


# --------------------------------------------------------------------------- #
# Wrapper
# --------------------------------------------------------------------------- #
def _round_up(a, m):
    return ((a + m - 1) // m) * m


def _pick_divisor_tile(total, want, align=128):
    """Largest tile <= want that divides total, preferring lane-aligned tiles."""
    want = max(1, min(want, total))
    if total % want == 0:
        return want
    t = (want // align) * align
    while t >= align:
        if total % t == 0:
            return t
        t -= align
    for t in range(want, 0, -1):
        if total % t == 0:
            return t
    return total


def _vmem_limit(bytes_needed):
    return int(min(max(int(bytes_needed * 1.3), 32 << 20), 100 << 20))


def dino_head_forward(x, params, *, tb=256, to=4096):
    """DINOHead.forward for x of shape (B, in_dim).

    params: w1,b1,w2,b2,w3,b3 (mlp, weights stored (in, out)),
            v = last_layer.weight_v (out_dim, bottleneck_dim),
            g = last_layer.weight_g (out_dim,)  (filled with 1 in the module).
    """
    B, in_dim = x.shape
    w1, b1, w2, b2, w3, b3 = (params[k] for k in ("w1", "b1", "w2", "b2", "w3", "b3"))
    hidden = w1.shape[1]
    bdim = w3.shape[1]
    v = params["v"]                                   # (out_dim, bdim)
    out_dim = v.shape[0]

    # bf16 MXU operands (f32 accumulation kept via preferred_element_type).
    w1b, w2b, w3b = (w.astype(jnp.bfloat16) for w in (w1, w2, w3))
    v_b = v.astype(jnp.bfloat16)
    # weight_norm scale (g / ||v_row||), computed once in f32.
    vf = v.astype(jnp.float32)
    scale = (params["g"].astype(jnp.float32) *
             lax.rsqrt(jnp.sum(vf * vf, axis=-1))).reshape(1, out_dim)

    # Batch tiling: sublane-aligned; >=2 tiles when possible (v7x 2-TC megacore).
    B8 = _round_up(B, 8)
    tb = max(8, min(tb, B8))
    if tb == B8 and tb >= 16 and (tb // 2) % 8 == 0:
        tb //= 2
    Bp = _round_up(B, tb)
    xb = x.astype(jnp.bfloat16)
    if Bp != B:
        xb = jnp.pad(xb, ((0, Bp - B), (0, 0)))
    nb = Bp // tb

    # out_dim tiling: largest lane-aligned divisor <= requested.
    to = _pick_divisor_tile(out_dim, to, 128)
    no = out_dim // to

    b1r = b1.reshape(1, -1).astype(jnp.float32)
    b2r = b2.reshape(1, -1).astype(jnp.float32)
    b3r = b3.reshape(1, -1).astype(jnp.float32)

    # ---- Kernel 1: fused MLP + L2 normalize, batch-gridded, weights resident.
    k1_bytes = (2 * 2 * (tb * in_dim + in_dim * hidden + hidden * hidden
                         + hidden * bdim + tb * bdim)        # bf16, double-buffered
                + 2 * 4 * (2 * hidden + bdim)                # f32 biases, double-buffered
                + 3 * 4 * tb * hidden)                       # f32 intermediates
    z = pl.pallas_call(
        _mlp_norm_kernel,
        out_shape=jax.ShapeDtypeStruct((Bp, bdim), jnp.bfloat16),
        grid=(nb,),
        in_specs=[
            pl.BlockSpec((tb, in_dim), lambda i: (i, 0)),
            pl.BlockSpec((in_dim, hidden), lambda i: (0, 0)),   # weights resident
            pl.BlockSpec((1, hidden), lambda i: (0, 0)),
            pl.BlockSpec((hidden, hidden), lambda i: (0, 0)),
            pl.BlockSpec((1, hidden), lambda i: (0, 0)),
            pl.BlockSpec((hidden, bdim), lambda i: (0, 0)),
            pl.BlockSpec((1, bdim), lambda i: (0, 0)),
        ],
        out_specs=pl.BlockSpec((tb, bdim), lambda i: (i, 0)),
        compiler_params=pltpu.CompilerParams(
            dimension_semantics=("parallel",),
            vmem_limit_bytes=_vmem_limit(k1_bytes)),
    )(xb, w1b, b1r, w2b, b2r, w3b, b3r)

    # ---- Kernel 2: weight-normed last layer.  out_dim is the OUTER grid axis
    # so every (to, bdim) v tile is streamed from HBM exactly once; only the
    # tiny z tile is re-fetched per batch tile.
    k2_bytes = (2 * (2 * tb * bdim + 2 * to * bdim + 4 * to + 4 * tb * to)
                + 4 * tb * to)
    out = pl.pallas_call(
        _wn_last_kernel,
        out_shape=jax.ShapeDtypeStruct((Bp, out_dim), jnp.float32),
        grid=(no, nb),
        in_specs=[
            pl.BlockSpec((tb, bdim), lambda j, i: (i, 0)),
            pl.BlockSpec((to, bdim), lambda j, i: (j, 0)),      # invariant over i
            pl.BlockSpec((1, to), lambda j, i: (0, j)),
        ],
        out_specs=pl.BlockSpec((tb, to), lambda j, i: (i, j)),
        compiler_params=pltpu.CompilerParams(
            dimension_semantics=("parallel", "parallel"),
            vmem_limit_bytes=_vmem_limit(k2_bytes)),
    )(z, v_b, scale)

    return out[:B]


# --------------------------------------------------------------------------- #
# Host-side parameter init (mirrors the module's __init__) and a pure-JAX ref
# --------------------------------------------------------------------------- #
def _trunc_normal(key, shape, mean=0.0, std=1.0, a=-2.0, b=2.0):
    def norm_cdf(v):
        return (1.0 + math.erf(v / math.sqrt(2.0))) / 2.0
    l = norm_cdf((a - mean) / std)
    u = norm_cdf((b - mean) / std)
    t = jax.random.uniform(key, shape, jnp.float32, 2 * l - 1, 2 * u - 1)
    t = jax.scipy.special.erfinv(t) * (std * math.sqrt(2.0)) + mean
    return jnp.clip(t, a, b)


def init_dino_head(key, in_dim, out_dim, hidden_dim=2048, bottleneck_dim=256):
    ks = jax.random.split(key, 4)
    w1 = _trunc_normal(ks[0], (in_dim, hidden_dim), std=0.02)
    w2 = _trunc_normal(ks[1], (hidden_dim, hidden_dim), std=0.02)
    w3 = _trunc_normal(ks[2], (hidden_dim, bottleneck_dim), std=0.02)
    b1 = jnp.zeros((hidden_dim,), jnp.float32)
    b2 = jnp.zeros((hidden_dim,), jnp.float32)
    b3 = jnp.zeros((bottleneck_dim,), jnp.float32)
    # last_layer keeps default nn.Linear init (created after self.apply(_init_weights));
    # weight_norm with weight_g filled with 1.
    lim = 1.0 / math.sqrt(bottleneck_dim)
    v = jax.random.uniform(ks[3], (out_dim, bottleneck_dim), jnp.float32, -lim, lim)
    g = jnp.ones((out_dim,), jnp.float32)
    return dict(w1=w1, b1=b1, w2=w2, b2=b2, w3=w3, b3=b3, v=v, g=g)


def dino_head_reference(x, params):
    hp = jax.lax.Precision.HIGHEST
    gelu = lambda t: 0.5 * t * (1.0 + jax.scipy.special.erf(t * _INV_SQRT2))
    h = gelu(jnp.dot(x, params["w1"], precision=hp) + params["b1"])
    h = gelu(jnp.dot(h, params["w2"], precision=hp) + params["b2"])
    z = jnp.dot(h, params["w3"], precision=hp) + params["b3"]
    z = z / jnp.maximum(jnp.linalg.norm(z, axis=-1, keepdims=True), 1e-12)
    v = params["v"]
    w = params["g"][:, None] * v / jnp.linalg.norm(v, axis=-1, keepdims=True)
    return jnp.dot(z, w.T, precision=hp)


if __name__ == "__main__":
    key = jax.random.PRNGKey(0)
    kx, kp = jax.random.split(key)

    # Small, lane/sublane-aligned shapes consistent with the module
    # (DINO defaults would be in_dim=768, hidden=2048, bottleneck=256, out_dim=65536).
    B, in_dim, hidden, bottleneck, out_dim = 32, 128, 256, 128, 256
    x = jax.random.normal(kx, (B, in_dim), jnp.float32)
    params = init_dino_head(kp, in_dim, out_dim,
                            hidden_dim=hidden, bottleneck_dim=bottleneck)

    fwd = jax.jit(partial(dino_head_forward, tb=256, to=4096))
    out = fwd(x, params)
    jax.block_until_ready(out)

    assert out.shape == (B, out_dim) and out.dtype == jnp.float32
    ref = dino_head_reference(x, params)
    err = float(jnp.max(jnp.abs(out - ref)))
    # bf16 operands with f32 accumulation: allow a looser bound than pure-f32.
    assert err < 2e-2, f"max abs err {err}"
    print("KERNEL_OK")
</pallas_src>

<mosaic_0001>
module attributes {stable_mosaic.version = 11 : i64} {
  func.func @_mlp_norm_kernel(%arg0: i32, %arg1: memref<16x128xbf16, #tpu.memory_space<vmem>>, %arg2: memref<128x256xbf16, #tpu.memory_space<vmem>>, %arg3: memref<1x256xf32, #tpu.memory_space<vmem>>, %arg4: memref<256x256xbf16, #tpu.memory_space<vmem>>, %arg5: memref<1x256xf32, #tpu.memory_space<vmem>>, %arg6: memref<256x128xbf16, #tpu.memory_space<vmem>>, %arg7: memref<1x128xf32, #tpu.memory_space<vmem>>, %arg8: memref<16x128xbf16, #tpu.memory_space<vmem>>) attributes {dimension_semantics = [#tpu.dimension_semantics<parallel>], iteration_bounds = array<i64: 2>, scalar_prefetch = 0 : i64, scratch_operands = 0 : i64, tpu.core_type = #tpu.core_type<tc>, window_params = [{transform_indices = @transform_0, window_bounds = array<i64: 16, 128>}, {pipeline_mode = #tpu.pipeline_mode<synchronous>, transform_indices = @transform_1, window_bounds = array<i64: 128, 256>}, {pipeline_mode = #tpu.pipeline_mode<synchronous>, transform_indices = @transform_2, window_bounds = array<i64: 1, 256>}, {pipeline_mode = #tpu.pipeline_mode<synchronous>, transform_indices = @transform_3, window_bounds = array<i64: 256, 256>}, {pipeline_mode = #tpu.pipeline_mode<synchronous>, transform_indices = @transform_4, window_bounds = array<i64: 1, 256>}, {pipeline_mode = #tpu.pipeline_mode<synchronous>, transform_indices = @transform_5, window_bounds = array<i64: 256, 128>}, {pipeline_mode = #tpu.pipeline_mode<synchronous>, transform_indices = @transform_6, window_bounds = array<i64: 1, 128>}, {transform_indices = @transform_7, window_bounds = array<i64: 16, 128>}]} {
    %c0 = arith.constant 0 : index
    %c0_0 = arith.constant 0 : index
    %0 = vector.load %arg1[%c0, %c0_0] : memref<16x128xbf16, #tpu.memory_space<vmem>>, vector<16x128xbf16>
    %c0_1 = arith.constant 0 : index
    %c0_2 = arith.constant 0 : index
    %1 = vector.load %arg2[%c0_1, %c0_2] : memref<128x256xbf16, #tpu.memory_space<vmem>>, vector<128x256xbf16>
    %cst = arith.constant dense<0.000000e+00> : vector<16x256xf32>
    %2 = tpu.matmul %0, %1, %cst {dimension_numbers = #tpu.dot_dimension_numbers<[1], [0], [0], [1], [0, 0, 1, 1], [], []>} : vector<16x128xbf16>, vector<128x256xbf16>, vector<16x256xf32> -> vector<16x256xf32>
    %c0_3 = arith.constant 0 : index
    %c0_4 = arith.constant 0 : index
    %3 = vector.load %arg3[%c0_3, %c0_4] : memref<1x256xf32, #tpu.memory_space<vmem>>, vector<1x256xf32>
    %4 = vector.broadcast %3 : vector<1x256xf32> to vector<16x256xf32>
    %5 = arith.addf %2, %4 : vector<16x256xf32>
    %cst_5 = arith.constant 5.000000e-01 : f32
    %6 = vector.broadcast %cst_5 : f32 to vector<16x256xf32>
    %7 = arith.mulf %6, %5 : vector<16x256xf32>
    %cst_6 = arith.constant 0.707106769 : f32
    %8 = vector.broadcast %cst_6 : f32 to vector<16x256xf32>
    %9 = arith.mulf %5, %8 : vector<16x256xf32>
    %10 = math.absf %9 : vector<16x256xf32>
    %cst_7 = arith.constant 0.327591091 : f32
    %11 = vector.broadcast %cst_7 : f32 to vector<16x256xf32>
    %12 = arith.mulf %11, %10 : vector<16x256xf32>
    %cst_8 = arith.constant 1.000000e+00 : f32
    %13 = vector.broadcast %cst_8 : f32 to vector<16x256xf32>
    %14 = arith.addf %13, %12 : vector<16x256xf32>
    %cst_9 = arith.constant 1.000000e+00 : f32
    %15 = vector.broadcast %cst_9 : f32 to vector<16x256xf32>
    %16 = arith.divf %15, %14 : vector<16x256xf32>
    %cst_10 = arith.constant 1.06140542 : f32
    %17 = vector.broadcast %cst_10 : f32 to vector<16x256xf32>
    %18 = arith.mulf %16, %17 : vector<16x256xf32>
    %cst_11 = arith.constant -1.45315206 : f32
    %19 = vector.broadcast %cst_11 : f32 to vector<16x256xf32>
    %20 = arith.addf %19, %18 : vector<16x256xf32>
    %21 = arith.mulf %16, %20 : vector<16x256xf32>
    %cst_12 = arith.constant 1.42141378 : f32
    %22 = vector.broadcast %cst_12 : f32 to vector<16x256xf32>
    %23 = arith.addf %22, %21 : vector<16x256xf32>
    %24 = arith.mulf %16, %23 : vector<16x256xf32>
    %cst_13 = arith.constant -0.284496725 : f32
    %25 = vector.broadcast %cst_13 : f32 to vector<16x256xf32>
    %26 = arith.addf %25, %24 : vector<16x256xf32>
    %27 = arith.mulf %16, %26 : vector<16x256xf32>
    %cst_14 = arith.constant 0.254829586 : f32
    %28 = vector.broadcast %cst_14 : f32 to vector<16x256xf32>
    %29 = arith.addf %28, %27 : vector<16x256xf32>
    %30 = arith.mulf %16, %29 : vector<16x256xf32>
    %31 = arith.mulf %10, %10 : vector<16x256xf32>
    %cst_15 = arith.constant 0.000000e+00 : f32
    %32 = vector.broadcast %cst_15 : f32 to vector<16x256xf32>
    %33 = arith.subf %32, %31 : vector<16x256xf32>
    %34 = math.exp %33 : vector<16x256xf32>
    %35 = arith.mulf %30, %34 : vector<16x256xf32>
    %cst_16 = arith.constant 1.000000e+00 : f32
    %36 = vector.broadcast %cst_16 : f32 to vector<16x256xf32>
    %37 = arith.subf %36, %35 : vector<16x256xf32>
    %cst_17 = arith.constant 0.000000e+00 : f32
    %38 = vector.broadcast %cst_17 : f32 to vector<16x256xf32>
    %39 = arith.cmpf olt, %9, %38 : vector<16x256xf32>
    %cst_18 = arith.constant 0.000000e+00 : f32
    %40 = vector.broadcast %cst_18 : f32 to vector<16x256xf32>
    %41 = arith.subf %40, %37 : vector<16x256xf32>
    %42 = arith.select %39, %41, %37 : vector<16x256xi1>, vector<16x256xf32>
    %cst_19 = arith.constant 1.000000e+00 : f32
    %43 = vector.broadcast %cst_19 : f32 to vector<16x256xf32>
    %44 = arith.addf %43, %42 : vector<16x256xf32>
    %45 = arith.mulf %7, %44 : vector<16x256xf32>
    %46 = arith.truncf %45 : vector<16x256xf32> to vector<16x256xbf16>
    %c0_20 = arith.constant 0 : index
    %c0_21 = arith.constant 0 : index
    %47 = vector.load %arg4[%c0_20, %c0_21] : memref<256x256xbf16, #tpu.memory_space<vmem>>, vector<256x256xbf16>
    %cst_22 = arith.constant dense<0.000000e+00> : vector<16x256xf32>
    %48 = tpu.matmul %46, %47, %cst_22 {dimension_numbers = #tpu.dot_dimension_numbers<[1], [0], [0], [1], [0, 0, 1, 1], [], []>} : vector<16x256xbf16>, vector<256x256xbf16>, vector<16x256xf32> -> vector<16x256xf32>
    %c0_23 = arith.constant 0 : index
    %c0_24 = arith.constant 0 : index
    %49 = vector.load %arg5[%c0_23, %c0_24] : memref<1x256xf32, #tpu.memory_space<vmem>>, vector<1x256xf32>
    %50 = vector.broadcast %49 : vector<1x256xf32> to vector<16x256xf32>
    %51 = arith.addf %48, %50 : vector<16x256xf32>
    %cst_25 = arith.constant 5.000000e-01 : f32
    %52 = vector.broadcast %cst_25 : f32 to vector<16x256xf32>
    %53 = arith.mulf %52, %51 : vector<16x256xf32>
    %cst_26 = arith.constant 0.707106769 : f32
    %54 = vector.broadcast %cst_26 : f32 to vector<16x256xf32>
    %55 = arith.mulf %51, %54 : vector<16x256xf32>
    %56 = math.absf %55 : vector<16x256xf32>
    %cst_27 = arith.constant 0.327591091 : f32
    %57 = vector.broadcast %cst_27 : f32 to vector<16x256xf32>
    %58 = arith.mulf %57, %56 : vector<16x256xf32>
    %cst_28 = arith.constant 1.000000e+00 : f32
    %59 = vector.broadcast %cst_28 : f32 to vector<16x256xf32>
    %60 = arith.addf %59, %58 : vector<16x256xf32>
    %cst_29 = arith.constant 1.000000e+00 : f32
    %61 = vector.broadcast %cst_29 : f32 to vector<16x256xf32>
    %62 = arith.divf %61, %60 : vector<16x256xf32>
    %cst_30 = arith.constant 1.06140542 : f32
    %63 = vector.broadcast %cst_30 : f32 to vector<16x256xf32>
    %64 = arith.mulf %62, %63 : vector<16x256xf32>
    %cst_31 = arith.constant -1.45315206 : f32
    %65 = vector.broadcast %cst_31 : f32 to vector<16x256xf32>
    %66 = arith.addf %65, %64 : vector<16x256xf32>
    %67 = arith.mulf %62, %66 : vector<16x256xf32>
    %cst_32 = arith.constant 1.42141378 : f32
    %68 = vector.broadcast %cst_32 : f32 to vector<16x256xf32>
    %69 = arith.addf %68, %67 : vector<16x256xf32>
    %70 = arith.mulf %62, %69 : vector<16x256xf32>
    %cst_33 = arith.constant -0.284496725 : f32
    %71 = vector.broadcast %cst_33 : f32 to vector<16x256xf32>
    %72 = arith.addf %71, %70 : vector<16x256xf32>
    %73 = arith.mulf %62, %72 : vector<16x256xf32>
    %cst_34 = arith.constant 0.254829586 : f32
    %74 = vector.broadcast %cst_34 : f32 to vector<16x256xf32>
    %75 = arith.addf %74, %73 : vector<16x256xf32>
    %76 = arith.mulf %62, %75 : vector<16x256xf32>
    %77 = arith.mulf %56, %56 : vector<16x256xf32>
    %cst_35 = arith.constant 0.000000e+00 : f32
    %78 = vector.broadcast %cst_35 : f32 to vector<16x256xf32>
    %79 = arith.subf %78, %77 : vector<16x256xf32>
    %80 = math.exp %79 : vector<16x256xf32>
    %81 = arith.mulf %76, %80 : vector<16x256xf32>
    %cst_36 = arith.constant 1.000000e+00 : f32
    %82 = vector.broadcast %cst_36 : f32 to vector<16x256xf32>
    %83 = arith.subf %82, %81 : vector<16x256xf32>
    %cst_37 = arith.constant 0.000000e+00 : f32
    %84 = vector.broadcast %cst_37 : f32 to vector<16x256xf32>
    %85 = arith.cmpf olt, %55, %84 : vector<16x256xf32>
    %cst_38 = arith.constant 0.000000e+00 : f32
    %86 = vector.broadcast %cst_38 : f32 to vector<16x256xf32>
    %87 = arith.subf %86, %83 : vector<16x256xf32>
    %88 = arith.select %85, %87, %83 : vector<16x256xi1>, vector<16x256xf32>
    %cst_39 = arith.constant 1.000000e+00 : f32
    %89 = vector.broadcast %cst_39 : f32 to vector<16x256xf32>
    %90 = arith.addf %89, %88 : vector<16x256xf32>
    %91 = arith.mulf %53, %90 : vector<16x256xf32>
    %92 = arith.truncf %91 : vector<16x256xf32> to vector<16x256xbf16>
    %c0_40 = arith.constant 0 : index
    %c0_41 = arith.constant 0 : index
    %93 = vector.load %arg6[%c0_40, %c0_41] : memref<256x128xbf16, #tpu.memory_space<vmem>>, vector<256x128xbf16>
    %cst_42 = arith.constant dense<0.000000e+00> : vector<16x128xf32>
    %94 = tpu.matmul %92, %93, %cst_42 {dimension_numbers = #tpu.dot_dimension_numbers<[1], [0], [0], [1], [0, 0, 1, 1], [], []>} : vector<16x256xbf16>, vector<256x128xbf16>, vector<16x128xf32> -> vector<16x128xf32>
    %c0_43 = arith.constant 0 : index
    %c0_44 = arith.constant 0 : index
    %95 = vector.load %arg7[%c0_43, %c0_44] : memref<1x128xf32, #tpu.memory_space<vmem>>, vector<1x128xf32>
    %96 = vector.broadcast %95 : vector<1x128xf32> to vector<16x128xf32>
    %97 = arith.addf %94, %96 : vector<16x128xf32>
    %98 = arith.mulf %97, %97 : vector<16x128xf32>
    %cst_45 = arith.constant dense<0.000000e+00> : vector<16xf32>
    %99 = vector.multi_reduction <add>, %98, %cst_45 [1] : vector<16x128xf32> to vector<16xf32>
    %100 = vector.shape_cast %99 : vector<16xf32> to vector<16x1xf32>
    %cst_46 = arith.constant 1.000000e-24 : f32
    %101 = vector.broadcast %cst_46 : f32 to vector<16x1xf32>
    %102 = arith.maximumf %100, %101 : vector<16x1xf32>
    %103 = math.rsqrt %102 : vector<16x1xf32>
    %104 = vector.broadcast %103 : vector<16x1xf32> to vector<16x128xf32>
    %105 = arith.mulf %97, %104 : vector<16x128xf32>
    %106 = arith.truncf %105 : vector<16x128xf32> to vector<16x128xbf16>
    %c0_47 = arith.constant 0 : index
    %c0_48 = arith.constant 0 : index
    %107 = vector.load %arg8[%c0_47, %c0_48] : memref<16x128xbf16, #tpu.memory_space<vmem>>, vector<16x128xbf16>
    tpu.vector_store %arg8[%c0_47, %c0_48], %106 {strides = array<i32>} : memref<16x128xbf16, #tpu.memory_space<vmem>>, vector<16x128xbf16>,
    return
  }
  func.func @transform_0(%arg0: i32) -> (i32, i32) {
    %c0_i32 = arith.constant 0 : i32
    %c0_i32_0 = arith.constant 0 : i32
    return %arg0, %c0_i32 : i32, i32
  }
  func.func @transform_1(%arg0: i32) -> (i32, i32) {
    %c0_i32 = arith.constant 0 : i32
    %c0_i32_0 = arith.constant 0 : i32
    %c0_i32_1 = arith.constant 0 : i32
    return %c0_i32, %c0_i32_0 : i32, i32
  }
  func.func @transform_2(%arg0: i32) -> (i32, i32) {
    %c0_i32 = arith.constant 0 : i32
    %c0_i32_0 = arith.constant 0 : i32
    %c0_i32_1 = arith.constant 0 : i32
    return %c0_i32, %c0_i32_0 : i32, i32
  }
  func.func @transform_3(%arg0: i32) -> (i32, i32) {
    %c0_i32 = arith.constant 0 : i32
    %c0_i32_0 = arith.constant 0 : i32
    %c0_i32_1 = arith.constant 0 : i32
    return %c0_i32, %c0_i32_0 : i32, i32
  }
  func.func @transform_4(%arg0: i32) -> (i32, i32) {
    %c0_i32 = arith.constant 0 : i32
    %c0_i32_0 = arith.constant 0 : i32
    %c0_i32_1 = arith.constant 0 : i32
    return %c0_i32, %c0_i32_0 : i32, i32
  }
  func.func @transform_5(%arg0: i32) -> (i32, i32) {
    %c0_i32 = arith.constant 0 : i32
    %c0_i32_0 = arith.constant 0 : i32
    %c0_i32_1 = arith.constant 0 : i32
    return %c0_i32, %c0_i32_0 : i32, i32
  }
  func.func @transform_6(%arg0: i32) -> (i32, i32) {
    %c0_i32 = arith.constant 0 : i32
    %c0_i32_0 = arith.constant 0 : i32
    %c0_i32_1 = arith.constant 0 : i32
    return %c0_i32, %c0_i32_0 : i32, i32
  }
  func.func @transform_7(%arg0: i32) -> (i32, i32) {
    %c0_i32 = arith.constant 0 : i32
    %c0_i32_0 = arith.constant 0 : i32
    return %arg0, %c0_i32 : i32, i32
  }
}

module attributes {stable_mosaic.version = 11 : i64} {
  func.func @_wn_last_kernel(%arg0: i32, %arg1: i32, %arg2: memref<16x128xbf16, #tpu.memory_space<vmem>>, %arg3: memref<256x128xbf16, #tpu.memory_space<vmem>>, %arg4: memref<1x256xf32, #tpu.memory_space<vmem>>, %arg5: memref<16x256xf32, #tpu.memory_space<vmem>>) attributes {dimension_semantics = [#tpu.dimension_semantics<parallel>, #tpu.dimension_semantics<parallel>], iteration_bounds = array<i64: 1, 2>, scalar_prefetch = 0 : i64, scratch_operands = 0 : i64, tpu.core_type = #tpu.core_type<tc>, window_params = [{transform_indices = @transform_0, window_bounds = array<i64: 16, 128>}, {transform_indices = @transform_1, window_bounds = array<i64: 256, 128>}, {transform_indices = @transform_2, window_bounds = array<i64: 1, 256>}, {transform_indices = @transform_3, window_bounds = array<i64: 16, 256>}]} {
    %c0 = arith.constant 0 : index
    %c0_0 = arith.constant 0 : index
    %0 = vector.load %arg2[%c0, %c0_0] : memref<16x128xbf16, #tpu.memory_space<vmem>>, vector<16x128xbf16>
    %c0_1 = arith.constant 0 : index
    %c0_2 = arith.constant 0 : index
    %1 = vector.load %arg3[%c0_1, %c0_2] : memref<256x128xbf16, #tpu.memory_space<vmem>>, vector<256x128xbf16>
    %cst = arith.constant dense<0.000000e+00> : vector<16x256xf32>
    %2 = tpu.matmul %0, %1, %cst {dimension_numbers = #tpu.dot_dimension_numbers<[1], [1], [0], [0], [0, 0, 1, 0], [], []>} : vector<16x128xbf16>, vector<256x128xbf16>, vector<16x256xf32> -> vector<16x256xf32>
    %c0_3 = arith.constant 0 : index
    %c0_4 = arith.constant 0 : index
    %3 = vector.load %arg4[%c0_3, %c0_4] : memref<1x256xf32, #tpu.memory_space<vmem>>, vector<1x256xf32>
    %4 = vector.broadcast %3 : vector<1x256xf32> to vector<16x256xf32>
    %5 = arith.mulf %2, %4 : vector<16x256xf32>
    %c0_5 = arith.constant 0 : index
    %c0_6 = arith.constant 0 : index
    %6 = vector.load %arg5[%c0_5, %c0_6] : memref<16x256xf32, #tpu.memory_space<vmem>>, vector<16x256xf32>
    tpu.vector_store %arg5[%c0_5, %c0_6], %5 {strides = array<i32>} : memref<16x256xf32, #tpu.memory_space<vmem>>, vector<16x256xf32>,
    return
  }
  func.func @transform_0(%arg0: i32, %arg1: i32) -> (i32, i32) {
    %c0_i32 = arith.constant 0 : i32
    %c0_i32_0 = arith.constant 0 : i32
    return %arg1, %c0_i32 : i32, i32
  }
  func.func @transform_1(%arg0: i32, %arg1: i32) -> (i32, i32) {
    %c0_i32 = arith.constant 0 : i32
    %c0_i32_0 = arith.constant 0 : i32
    return %arg0, %c0_i32 : i32, i32
  }
  func.func @transform_2(%arg0: i32, %arg1: i32) -> (i32, i32) {
    %c0_i32 = arith.constant 0 : i32
    %c0_i32_0 = arith.constant 0 : i32
    return %c0_i32, %arg0 : i32, i32
  }
  func.func @transform_3(%arg0: i32, %arg1: i32) -> (i32, i32) {
    %c0_i32 = arith.constant 0 : i32
    return %arg1, %arg0 : i32, i32
  }
}

</mosaic_0001>

<bundles_post_ra>
// kernel: dino_head_forward.3
= control target key start
LH: loop header
LB: loop body
LE: loop exit
PB: predicated region body
PF: predicated region fallthrough
CT: control target
= control target key end

     0   :  { %8 = vsyncpa [#allocation3], 0  ;;  %s940_s0 = inlined_call_operand.vmem [shape: bf16[32,128], index: 0, kind: input, shape index: {}]   ;;  %s941_s1 = inlined_call_operand.vmem [shape: bf16[256,128], index: 1, kind: input, shape index: {}]   ;;  %s942_s2 = inlined_call_operand.vmem [shape: f32[1,256], index: 2, kind: input, shape index: {}]   ;;  %s943_s3 = inlined_call_operand.hbm [shape: f32[32,256], index: 3, kind: output, shape index: {}]  }
   0x1   :  { %10 = vsyncpa [#allocation3 + $0x1], 0  ;;  %s775_s12 = smov 0   ;;  %s777_s13 = smov 0  }
   0x2   :  { %s779_s14 = smov 0   ;;  %s781_s15 = smov 0  }
   0x3   :  { %s783_s16 = smov 0   ;;  %s785_s17 = smov 0  }
   0x4 LB: > { %s545_s18 = sadd.s32 4294967295, %s750_s17   ;;  %s546_s19 = sadd.s32 4294967294, %s750_s17   ;;  %s750_s17 = sphi %s785_s17, %s16_s17   ;;  %s746_s16 = sphi %s783_s16, %s950_s16   ;;  %s742_s15 = sphi %s781_s15, %s949_s15   ;;  %s738_s14 = sphi %s779_s14, %s948_s14   ;;  %s734_s13 = sphi %s777_s13, %s947_s13   ;;  %s730_s12 = sphi %s775_s12, %s946_s12  }
   0x5   : > { %s25_s20 = sadd.s32 1, %s746_s16  ;;  %s115_s21 = sadd.s32 1, %s738_s14 }
   0x6   : > { %p26_p0 = scmp.ge.s32.totalorder %s25_s20, 2  ;;  %p125_p1 = scmp.ne.s32.totalorder %s738_s14, %s734_s13 }
   0x7   : > { %p126_p2 = scmp.eq.s32.totalorder %s545_s18, 1  ;;  %p131_p3 = scmp.ne.s32.totalorder %s734_s13, %s730_s12 }
   0x8   : > { %s952_s20 = smov (%p26_p0, %s25_s20), 0  ;;  %p132_p5 = scmp.eq.s32.totalorder %s546_s19, 1 }
   0x9   : > { %p815_p4 = por %p126_p2, %p125_p1  ;;  %s110_s23 = ssub.s32 %s746_s16, %s952_s20 }
   0xa   : > { %p551_p6 = scmp.ge.s32.totalorder %s750_s17, 1  ;;  %p113_p7 = scmp.eq.s32.totalorder %s110_s23, 0 }
   0xb   : > { %p822_p8 = por %p132_p5, %p131_p3  ;;  %p176_p9 = scmp.lt.s32.totalorder %s750_s17, 3 }
   0xc   : > { %s828_s25 = scalar_select %p113_p7, %s738_s14, %s115_s21  }
   0xd   : > { %p177_p10 = pnand %p551_p6, %p176_p9 }
   0xe   : > { %v655_v0 = vld [vmem:[%s941_s1 + $0x40] sm:$0xff] (!%p177_p10)   ;;  %s553_s28 = sshll.u32 (!%p177_p10), %s742_s15, 1  ;;  %v657_v2 = vld [vmem:[%s941_s1 + $0x48] sm:$0xff] (!%p177_p10)   ;;  %v659_v4 = vld [vmem:[%s941_s1 + $0x50] sm:$0xff] (!%p177_p10)   ;;  %v410_v17 = vlaneseq (!%p177_p10)  ;;  %s579_s8 = sshll.u32 (!%p177_p10), %s742_s15, 9 }
   0xf   : > { %180 = sbr.rel (%p177_p10) target bundleno = 311 (0x137), region = 32  ;;  %v656_v1 = vld [vmem:[%s941_s1] sm:$0xff] (!%p177_p10)   ;;  %580 = vmatprep.subr.bf16.mxu0 (!%p177_p10), %v655_v0  ;;  %p210_p11 = scmp.lt.s32.totalorder (!%p177_p10), %s553_s28, 3  ;;  %v658_v3 = vld [vmem:[%s941_s1 + $0x8] sm:$0xff] (!%p177_p10)   ;;  %v660_v5 = vld [vmem:[%s941_s1 + $0x10] sm:$0xff] (!%p177_p10)  }
  0x10   : > { %581 = vmatpush3.bf16.xpose.msra.mxu0 (!%p177_p10), %v656_v1  ;;  %v661_v6 = vld [vmem:[%s941_s1 + $0x58] sm:$0xff] (!%p177_p10)   ;;  %v663_v9 = vld [vmem:[%s941_s1 + $0x60] sm:$0xff] (!%p177_p10)   ;;  %v665_v11 = vld [vmem:[%s941_s1 + $0x68] sm:$0xff] (!%p177_p10)   ;;  %v411_v18 = vshrl.u32 (!%p177_p10), %v410_v17, 7  ;;  %s892_s11 = scalar_lea.hbm (!%p177_p10), %s943_s3, %s579_s8 }
  0x11   : > { %582 = vmatprep.subr.bf16.mxu0 (!%p177_p10), %v657_v2  ;;  %v662_v8 = vld [vmem:[%s941_s1 + $0x18] sm:$0xff] (!%p177_p10)   ;;  %v664_v10 = vld [vmem:[%s941_s1 + $0x20] sm:$0xff] (!%p177_p10)   ;;  %v666_v12 = vld [vmem:[%s941_s1 + $0x28] sm:$0xff] (!%p177_p10)  }
  0x12   : > { %v667_v13 = vld [vmem:[%s941_s1 + $0x70] sm:$0xff] (!%p177_p10)   ;;  %v669_v15 = vld [vmem:[%s941_s1 + $0x78] sm:$0xff] (!%p177_p10)   ;;  %v412_v19 = vsub.s32 (!%p177_p10), 0, %v411_v18  ;;  %v408_v20 = vld [vmem:[%s942_s2] sm:$0x3] (!%p177_p10)  ;;  %v416_v21 = vsub.s32 (!%p177_p10), 1, %v411_v18 }
  0x13   : > { %v668_v14 = vld [vmem:[%s941_s1 + $0x30] sm:$0xff] (!%p177_p10)   ;;  %v670_v16 = vld [vmem:[%s941_s1 + $0x38] sm:$0xff] (!%p177_p10)  }
  0x14   : > { %v413_v22 = vrot.slane (!%p177_p10), %v408_v20, %v412_v19  ;;  %v417_v23 = vrot.slane (!%p177_p10), %v408_v20, %v416_v21 }
  0x16   : > { %s954_s28 = smov (!%p210_p11, %s553_s28), 3 }
  0x17   : > { %s554_s10 = sshll.u32 %s954_s28, 2  ;;  %s206_s28 = sand.u32 1, %s734_s13  }
  0x18   : > { %583 = vmatpush3.bf16.xpose.msra.mxu0 %v658_v3  ;;  %s213_s19 = scalar_lea.vmem %s940_s0, %s554_s10  ;;  %s552_s5 = sshll.u32 %s206_s28, 5 }
  0x19   : > { %584 = vmatprep.subr.bf16.mxu0 %v659_v4  ;;  %v671_v7 = vld [vmem:[%s213_s19] sm:$0xff]   ;;  %s208_s6 = scalar_lea.vmem [#allocation2], %s552_s5  ;;  %s894_s15 = scalar_lea.sflag [#allocation3], %s206_s28 }
  0x1a   : > { %596 = vmatprep.mubr.bf16.mxu0 %v671_v7  ;;  %s445_s7 = sshll.u32 %s208_s6, 4  ;;  %s752_s19 = smov [#allocation2]   ;;  %s887_s7 = int_to_ptr.vmem [resolvable:$true] %s445_s7 }
  0x1b   : > { %s672_s18 = scalar_lea.vmem %s887_s7, 512  ;;  %s676_s21 = sshll.u32 %s752_s19, 4  ;;  %s677_s21 = int_to_ptr.vmem [resolvable:$false] %s676_s21 }
  0x1c   : > { %p673_p12 = scmp.ne.s32.totalorder %s887_s7, %s672_s18  ;;  %s678_s23 = scalar_lea.vmem %s677_s21, 1024 }
  0x1d   : > { %p679_p1 = scmp.lt.s32.totalorder %s887_s7, %s677_s21  ;;  %p680_p2 = scmp.lt.s32.totalorder %s678_s23, %s672_s18 }
  0x1e   : > { %p674_p13 = pnand %p673_p12, %p815_p4 }
  0x1f   : > { %p681_p3 = por %p680_p2, %p679_p1 }
  0x20   : > { %585 = vmatpush3.bf16.xpose.msra.mxu0 %v660_v5  ;;  %p675_p0 = pneg %p674_p13 }
  0x21   : > { %586 = vmatprep.subr.bf16.mxu0 %v661_v6 }
  0x22   : > { %p682_p5 = pnand %p681_p3, %p675_p0 }
  0x28   : > { %587 = vmatpush3.bf16.xpose.msra.mxu0 %v662_v8 }
  0x29   : > { %588 = vmatprep.subr.bf16.mxu0 %v663_v9 }
  0x30   : > { %589 = vmatpush3.bf16.xpose.msra.mxu0 %v664_v10 }
  0x31   : > { %590 = vmatprep.subr.bf16.mxu0 %v665_v11 }
  0x38   : > { %591 = vmatpush3.bf16.xpose.msra.mxu0 %v666_v12 }
  0x39   : > { %592 = vmatprep.subr.bf16.mxu0 %v667_v13 }
  0x40   : > { %593 = vmatpush3.bf16.xpose.msra.mxu0 %v668_v14 }
  0x41   : > { %594 = vmatprep.subr.bf16.mxu0 %v669_v15 }
  0x48   : > { %595 = vmatpush3.bf16.xpose.msra.mxu0 %v670_v16 }
  0x4f   : > { %597 = vmatmul.mubr.bf16.vlgmr.msra.gmra.mrb[0].mxu0 %v671_v7 }
 0x122   : > { %v399_v24 = vpop.f32.mrb[0].mxu0 }
 0x123   : > { %v420_v25 = vmul.f32 %v413_v22, %v399_v24  ;;  %v401_v26 = vpop.f32.mrb[1].mxu0 }
 0x124   : > { %v421_v27 = vmul.f32 %v417_v23, %v401_v26  ;;  %v403_v28 = vpop.f32.mrb[2].mxu0 }
 0x125   : > { %424 = vst [vmem:[%s208_s6] sm:$0xff] %v420_v25  ;;  %v422_v29 = vmul.f32 %v413_v22, %v403_v28  ;;  %v405_v30 = vpop.f32.mrb[3].mxu0 }
 0x126   : > { %425 = vst [vmem:[%s208_s6 + $0x8] sm:$0xff] %v421_v27  ;;  %v423_v31 = vmul.f32 %v417_v23, %v405_v30 }
 0x127   : > { %426 = vst [vmem:[%s208_s6 + $0x10] sm:$0xff] %v422_v29 }
 0x128   : > { %427 = vst [vmem:[%s208_s6 + $0x18] sm:$0xff] %v423_v31 }
 0x129   : > { %685 = shalt.err (!%p682_p5)
}
 0x12a   : > { %s686_s26 = scalar_lea.hbm %s892_s11, 512  ;;  %s690_s28 = scalar_lea.hbm %s943_s3, 1024 }
 0x12b   : > { %p687_p6 = scmp.ne.s32.totalorder %s892_s11, %s686_s26  ;;  %p691_p10 = scmp.lt.u32.totalorder %s892_s11, %s943_s3 }
 0x12c   : > { %p692_p11 = scmp.lt.u32.totalorder %s690_s28, %s686_s26  ;;  %p694_p13 = scmp.lt.u32.totalorder %s686_s26, %s892_s11 }
 0x12d   : > { %p688_p7 = pnand %p687_p6, %p815_p4 }
 0x12e   : > { %p693_p12 = por %p692_p11, %p691_p10 }
 0x12f   : > { %p689_p9 = pneg %p688_p7 }
 0x130   : > { %p695_p0 = por %p694_p13, %p693_p12 }
 0x132   : > { %p696_p1 = pnand %p695_p0, %p689_p9 }
 0x134   : > { %699 = shalt.err (!%p696_p1)
}
 0x135   : > { %s753_s5 = smov 256   ;;  %s754_s6 = smov 16  }
 0x136   : > { %598 = dma.vmem_to_hbm [thread:$0]  (%p815_p4), %s887_s7, 512, %s892_s11, %s894_s15, %s753_s5, %s753_s5, %s754_s6  }
 0x137 PF: > { %p604_p2 = scmp.ge.s32.totalorder %s750_s17, 2  ;;  %s460_s8 = sand.u32 1, %s730_s12  }
 0x138   : > { %s461_s9 = scalar_lea.sflag [#allocation3], %s460_s8 }
 0x139   : > { %p601_p3 = pnand %p604_p2, %p822_p8 }
 0x13b   : > { %725 = dma.done.wait (!%p601_p3), %s461_s9, 512  }
 0x13c   : > { %727 = vsyncadd (!%p601_p3), %s461_s9, 4294966784  ;;  %s16_s17 = sadd.s32 1, %s750_s17   ;;  %s946_s12 = smov %s734_s13 }
 0x13d   : > { %p13_p5 = scmp.ge.s32.totalorder %s16_s17, 4   ;;  %s947_s13 = smov %s738_s14 }
 0x13e   : > { %s948_s14 = smov %s828_s25  ;;  %s949_s15 = smov %s746_s16 }
 0x13f   : > { %s950_s16 = smov %s952_s20  ;;  %15 = sbr.rel (!%p13_p5) target bundleno = 4 (0x4), region = 73 }
 0x146   :  { %466 = vsyncpa [#allocation3], 1 }
 0x147   :  { %468 = vsyncpa [#allocation3 + $0x1], 1 }

// kernel: dino_head_forward.2
= control target key start
LH: loop header
LB: loop body
LE: loop exit
PB: predicated region body
PF: predicated region fallthrough
CT: control target
= control target key end

     0   :  { %s1454_s24 = smov 0   ;;  %s1755_s0 = inlined_call_operand.vmem [shape: bf16[32,128], index: 0, kind: input, shape index: {}]   ;;  %s1756_s1 = inlined_call_operand.vmem [shape: bf16[128,256], index: 1, kind: input, shape index: {}]   ;;  %s1757_s2 = inlined_call_operand.vmem [shape: f32[1,256], index: 2, kind: input, shape index: {}]   ;;  %s1758_s3 = inlined_call_operand.vmem [shape: bf16[256,256], index: 3, kind: input, shape index: {}]   ;;  %s1759_s4 = inlined_call_operand.vmem [shape: f32[1,256], index: 4, kind: input, shape index: {}]   ;;  %s1760_s5 = inlined_call_operand.vmem [shape: bf16[256,128], index: 5, kind: input, shape index: {}]   ;;  %s1761_s6 = inlined_call_operand.vmem [shape: f32[1,128], index: 6, kind: input, shape index: {}]   ;;  %s1762_s7 = inlined_call_operand.vmem [shape: bf16[32,128], index: 7, kind: output, shape index: {}]  }
   0x1 LB: > { %s1163_s25 = sadd.s32 4294967295, %s1411_s24   ;;  %p1167_p0 = scmp.ge.s32.totalorder %s1411_s24, 1  ;;  %s1411_s24 = sphi %s1454_s24, %s17_s24  }
   0x2   : > { %p238_p1 = scmp.lt.s32.totalorder %s1411_s24, 3 }
   0x4   : > { %p239_p2 = pnand %p1167_p0, %p238_p1 }
   0x5   : > { %v1280_v0 = vld [vmem:[%s1756_s1 + $0x4] ss:$8 sps:$4 sm:$0xff] (!%p239_p2)   ;;  %s1168_s28 = sshll.u32 (!%p239_p2), %s1163_s25, 1  ;;  %v1282_v1 = vld [vmem:[%s1756_s1] ss:$8 sps:$4 sm:$0xff] (!%p239_p2)   ;;  %v1413_v2 = vmov (!%p239_p2), 0   ;;  %v303_v50 = vlaneseq (!%p239_p2) }
   0x6   : > { %242 = sbr.rel (%p239_p2) target bundleno = 957 (0x3bd), region = 48  ;;  %431 = vmatprep.mubr.bf16.mxu0 (!%p239_p2), %v1413_v2  ;;  %p271_p3 = scmp.lt.s32.totalorder (!%p239_p2), %s1168_s28, 3  ;;  %399 = vmatprep.subr.bf16.mxu0 (!%p239_p2), %v1280_v0  ;;  %v1283_v3 = vld [vmem:[%s1756_s1 + $0x14] ss:$8 sps:$4 sm:$0xff] (!%p239_p2)   ;;  %v1285_v4 = vld [vmem:[%s1756_s1 + $0x10] ss:$8 sps:$4 sm:$0xff] (!%p239_p2)  }
   0x7   : > { %400 = vmatpush1.bf16.msra.mxu0 (!%p239_p2), %v1282_v1  ;;  %v1286_v5 = vld [vmem:[%s1756_s1 + $0x24] ss:$8 sps:$4 sm:$0xff] (!%p239_p2)   ;;  %v1288_v6 = vld [vmem:[%s1756_s1 + $0x20] ss:$8 sps:$4 sm:$0xff] (!%p239_p2)   ;;  %v1289_v7 = vld [vmem:[%s1756_s1 + $0x34] ss:$8 sps:$4 sm:$0xff] (!%p239_p2)  }
   0x8   : > { %401 = vmatprep.subr.bf16.mxu0 (!%p239_p2), %v1283_v3  ;;  %v1291_v8 = vld [vmem:[%s1756_s1 + $0x30] ss:$8 sps:$4 sm:$0xff] (!%p239_p2)   ;;  %v1292_v9 = vld [vmem:[%s1756_s1 + $0x44] ss:$8 sps:$4 sm:$0xff] (!%p239_p2)   ;;  %v1307_v11 = vld [vmem:[%s1758_s3] ss:$8 sps:$4 sm:$0xff] (!%p239_p2)  }
   0x9   : > { %v1305_v10 = vld [vmem:[%s1758_s3 + $0x4] ss:$8 sps:$4 sm:$0xff] (!%p239_p2)   ;;  %v1294_v12 = vld [vmem:[%s1756_s1 + $0x40] ss:$8 sps:$4 sm:$0xff] (!%p239_p2)   ;;  %v1308_v13 = vld [vmem:[%s1758_s3 + $0x14] ss:$8 sps:$4 sm:$0xff] (!%p239_p2)  }
   0xa   : > { %v1295_v14 = vld [vmem:[%s1756_s1 + $0x54] ss:$8 sps:$4 sm:$0xff] (!%p239_p2)   ;;  %756 = vmatprep.subr.bf16.mxu1 (!%p239_p2), %v1305_v10  ;;  %v1310_v15 = vld [vmem:[%s1758_s3 + $0x10] ss:$8 sps:$4 sm:$0xff] (!%p239_p2)   ;;  %v1298_v17 = vld [vmem:[%s1756_s1 + $0x64] ss:$8 sps:$4 sm:$0xff] (!%p239_p2)  }
   0xb   : > { %402 = vmatpush1.bf16.msra.mxu0 (!%p239_p2), %v1285_v4  ;;  %757 = vmatpush1.bf16.msra.mxu1 (!%p239_p2), %v1307_v11  ;;  %v1297_v16 = vld [vmem:[%s1756_s1 + $0x50] ss:$8 sps:$4 sm:$0xff] (!%p239_p2)   ;;  %v1300_v18 = vld [vmem:[%s1756_s1 + $0x60] ss:$8 sps:$4 sm:$0xff] (!%p239_p2)   ;;  %v1301_v19 = vld [vmem:[%s1756_s1 + $0x74] ss:$8 sps:$4 sm:$0xff] (!%p239_p2)  }
   0xc   : > { %403 = vmatprep.subr.bf16.mxu0 (!%p239_p2), %v1286_v5  ;;  %758 = vmatprep.subr.bf16.mxu1 (!%p239_p2), %v1308_v13  ;;  %v1303_v20 = vld [vmem:[%s1756_s1 + $0x70] ss:$8 sps:$4 sm:$0xff] (!%p239_p2)   ;;  %v1311_v22 = vld [vmem:[%s1758_s3 + $0x24] ss:$8 sps:$4 sm:$0xff] (!%p239_p2)   ;;  %v1313_v23 = vld [vmem:[%s1758_s3 + $0x20] ss:$8 sps:$4 sm:$0xff] (!%p239_p2)  }
   0xd   : > { %s1764_s28 = smov (!%p271_p3, %s1168_s28), 3  ;;  %v1314_v24 = vld [vmem:[%s1758_s3 + $0x34] ss:$8 sps:$4 sm:$0xff]   ;;  %v1316_v25 = vld [vmem:[%s1758_s3 + $0x30] ss:$8 sps:$4 sm:$0xff]   ;;  %v1614_v51 = vshrl.u32 %v303_v50, 7 }
   0xe   : > { %s1169_s14 = sshll.u32 %s1764_s28, 2  ;;  %v1317_v26 = vld [vmem:[%s1758_s3 + $0x44] ss:$8 sps:$4 sm:$0xff]   ;;  %v1319_v27 = vld [vmem:[%s1758_s3 + $0x40] ss:$8 sps:$4 sm:$0xff]  }
   0xf   : > { %s274_s21 = scalar_lea.vmem %s1755_s0, %s1169_s14  ;;  %404 = vmatpush1.bf16.msra.mxu0 %v1288_v6  ;;  %759 = vmatpush1.bf16.msra.mxu1 %v1310_v15  ;;  %v1320_v28 = vld [vmem:[%s1758_s3 + $0x54] ss:$8 sps:$4 sm:$0xff]   ;;  %v1322_v29 = vld [vmem:[%s1758_s3 + $0x50] ss:$8 sps:$4 sm:$0xff]   ;;  %v1323_v30 = vld [vmem:[%s1758_s3 + $0x64] ss:$8 sps:$4 sm:$0xff]   ;;  %s280_s26 = scalar_lea.vmem %s1762_s7, %s1169_s14 }
  0x10   : > { %405 = vmatprep.subr.bf16.mxu0 %v1289_v7  ;;  %v1304_v21 = vld [vmem:[%s274_s21] sm:$0xff]   ;;  %760 = vmatprep.subr.bf16.mxu1 %v1311_v22  ;;  %v1326_v32 = vld [vmem:[%s1758_s3 + $0x74] ss:$8 sps:$4 sm:$0xff]   ;;  %v1328_v33 = vld [vmem:[%s1758_s3 + $0x70] ss:$8 sps:$4 sm:$0xff]   ;;  %v305_v52 = vsub.s32 0, %v1614_v51 }
  0x11   : > { %v1325_v31 = vld [vmem:[%s1758_s3 + $0x60] ss:$8 sps:$4 sm:$0xff]   ;;  %v1329_v34 = vld [vmem:[%s1758_s3 + $0x84] ss:$8 sps:$4 sm:$0xff]   ;;  %v1332_v36 = vld [vmem:[%s1758_s3 + $0x94] ss:$8 sps:$4 sm:$0xff]  }
  0x12   : > { %v1331_v35 = vld [vmem:[%s1758_s3 + $0x80] ss:$8 sps:$4 sm:$0xff]   ;;  %v1334_v37 = vld [vmem:[%s1758_s3 + $0x90] ss:$8 sps:$4 sm:$0xff]   ;;  %v1335_v38 = vld [vmem:[%s1758_s3 + $0xa4] ss:$8 sps:$4 sm:$0xff]  }
  0x13   : > { %406 = vmatpush1.bf16.msra.mxu0 %v1291_v8  ;;  %761 = vmatpush1.bf16.msra.mxu1 %v1313_v23  ;;  %v1337_v39 = vld [vmem:[%s1758_s3 + $0xa0] ss:$8 sps:$4 sm:$0xff]   ;;  %v1338_v40 = vld [vmem:[%s1758_s3 + $0xb4] ss:$8 sps:$4 sm:$0xff]   ;;  %v1340_v41 = vld [vmem:[%s1758_s3 + $0xb0] ss:$8 sps:$4 sm:$0xff]  }
  0x14   : > { %407 = vmatprep.subr.bf16.mxu0 %v1292_v9  ;;  %762 = vmatprep.subr.bf16.mxu1 %v1314_v24  ;;  %v1341_v42 = vld [vmem:[%s1758_s3 + $0xc4] ss:$8 sps:$4 sm:$0xff]   ;;  %v1343_v43 = vld [vmem:[%s1758_s3 + $0xc0] ss:$8 sps:$4 sm:$0xff]   ;;  %v1344_v44 = vld [vmem:[%s1758_s3 + $0xd4] ss:$8 sps:$4 sm:$0xff]  }
  0x15   : > { %v1346_v45 = vld [vmem:[%s1758_s3 + $0xd0] ss:$8 sps:$4 sm:$0xff]   ;;  %v1347_v46 = vld [vmem:[%s1758_s3 + $0xe4] ss:$8 sps:$4 sm:$0xff]   ;;  %v1349_v47 = vld [vmem:[%s1758_s3 + $0xe0] ss:$8 sps:$4 sm:$0xff]  }
  0x16   : > { %v1350_v48 = vld [vmem:[%s1758_s3 + $0xf4] ss:$8 sps:$4 sm:$0xff]   ;;  %v1352_v49 = vld [vmem:[%s1758_s3 + $0xf0] ss:$8 sps:$4 sm:$0xff]   ;;  %v301_v53 = vld [vmem:[%s1757_s2] sm:$0x3] }
  0x17   : > { %408 = vmatpush1.bf16.msra.mxu0 %v1294_v12  ;;  %763 = vmatpush1.bf16.msra.mxu1 %v1316_v25  ;;  %v309_v54 = vsub.s32 1, %v1614_v51  ;;  %v306_v55 = vrot.slane %v301_v53, %v305_v52 }
  0x18   : > { %409 = vmatprep.subr.bf16.mxu0 %v1295_v14  ;;  %764 = vmatprep.subr.bf16.mxu1 %v1317_v26 }
  0x19   : > { %v310_v56 = vrot.slane %v301_v53, %v309_v54 }
  0x1b   : > { %410 = vmatpush1.bf16.msra.mxu0 %v1297_v16  ;;  %765 = vmatpush1.bf16.msra.mxu1 %v1319_v27 }
  0x1c   : > { %411 = vmatprep.subr.bf16.mxu0 %v1298_v17  ;;  %766 = vmatprep.subr.bf16.mxu1 %v1320_v28 }
  0x1f   : > { %412 = vmatpush1.bf16.msra.mxu0 %v1300_v18  ;;  %767 = vmatpush1.bf16.msra.mxu1 %v1322_v29 }
  0x20   : > { %413 = vmatprep.subr.bf16.mxu0 %v1301_v19  ;;  %768 = vmatprep.subr.bf16.mxu1 %v1323_v30 }
  0x23   : > { %414 = vmatpush1.bf16.msra.mxu0 %v1303_v20  ;;  %769 = vmatpush1.bf16.msra.mxu1 %v1325_v31 }
  0x24   : > { %770 = vmatprep.subr.bf16.mxu1 %v1326_v32 }
  0x26   : > { %432 = vmatmul.mubr.bf16.vlgmr.msra.gmra.mrb[0].mxu0 %v1304_v21 }
  0x27   : > { %771 = vmatpush1.bf16.msra.mxu1 %v1328_v33 }
  0x28   : > { %772 = vmatprep.subr.bf16.mxu1 %v1329_v34 }
  0x2b   : > { %773 = vmatpush1.bf16.msra.mxu1 %v1331_v35 }
  0x2c   : > { %774 = vmatprep.subr.bf16.mxu1 %v1332_v36 }
  0x2f   : > { %775 = vmatpush1.bf16.msra.mxu1 %v1334_v37 }
  0x30   : > { %776 = vmatprep.subr.bf16.mxu1 %v1335_v38 }
  0x33   : > { %777 = vmatpush1.bf16.msra.mxu1 %v1337_v39 }
  0x34   : > { %778 = vmatprep.subr.bf16.mxu1 %v1338_v40 }
  0x37   : > { %779 = vmatpush1.bf16.msra.mxu1 %v1340_v41 }
  0x38   : > { %780 = vmatprep.subr.bf16.mxu1 %v1341_v42 }
  0x3b   : > { %781 = vmatpush1.bf16.msra.mxu1 %v1343_v43 }
  0x3c   : > { %782 = vmatprep.subr.bf16.mxu1 %v1344_v44 }
  0x3f   : > { %783 = vmatpush1.bf16.msra.mxu1 %v1346_v45 }
  0x40   : > { %784 = vmatprep.subr.bf16.mxu1 %v1347_v46 }
  0x43   : > { %785 = vmatpush1.bf16.msra.mxu1 %v1349_v47 }
  0x44   : > { %786 = vmatprep.subr.bf16.mxu1 %v1350_v48 }
  0x47   : > { %787 = vmatpush1.bf16.msra.mxu1 %v1352_v49 }
  0xf9   : > { %v433_v57 = vpop.f32.mrb[0].mxu0 }
  0xfa   : > { %v1625_v58 = vadd.f32 %v433_v57, %v306_v55  ;;  %v435_v59 = vpop.f32.mrb[1].mxu0 }
  0xfb   : > { %v1627_v60 = vadd.f32 %v435_v59, %v310_v56  ;;  %v437_v61 = vpop.f32.mrb[2].mxu0 }
  0xfc   : > { %v1630_v62 = vmul.f32 0.70710677, %v1625_v58  ;;  %v1632_v63 = vadd.f32 %v437_v61, %v306_v55  ;;  %v439_v0 = vpop.f32.mrb[3].mxu0 }
  0xfd   : > { %v1635_v1 = vmul.f32 0.70710677, %v1627_v60  ;;  %v1637_v2 = vadd.f32 %v439_v0, %v310_v56 }
  0xfe   : > { %v450_v3 = vand.u32 2147483647, %v1630_v62  ;;  %v1641_v4 = vmul.f32 0.70710677, %v1632_v63  ;;  %vm530_vm0 = vcmp.lt.f32.partialorder %v1630_v62, 0.0 }
  0xff   : > { %v451_v5 = vand.u32 2147483647, %v1635_v1  ;;  %v1645_v6 = vmul.f32 0.70710677, %v1637_v2  ;;  %vm531_vm1 = vcmp.lt.f32.partialorder %v1635_v1, 0.0 }
 0x100   : > { %v454_v7 = vmul.f32 0.3275911, %v450_v3  ;;  %v452_v8 = vand.u32 2147483647, %v1641_v4  ;;  %v506_v17 = vmul.f32 %v450_v3, %v450_v3  ;;  %vm532_vm2 = vcmp.lt.f32.partialorder %v1641_v4, 0.0 }
 0x101   : > { %v455_v9 = vmul.f32 0.3275911, %v451_v5  ;;  %v453_v10 = vand.u32 2147483647, %v1645_v6  ;;  %v507_v18 = vmul.f32 %v451_v5, %v451_v5  ;;  %vm533_vm3 = vcmp.lt.f32.partialorder %v1645_v6, 0.0  ;;  %v1356_v6 = vld [vmem:[%s1760_s5 + $0x8] sm:$0xff]  }
 0x102   : > { %v458_v11 = vadd.f32 1.0, %v454_v7  ;;  %v456_v12 = vmul.f32 0.3275911, %v452_v8  ;;  %v510_v20 = vsub.f32 0.0, %v506_v17  ;;  %v508_v21 = vmul.f32 %v452_v8, %v452_v8 }
 0x103   : > { %v459_v13 = vadd.f32 1.0, %v455_v9  ;;  %v457_v14 = vmul.f32 0.3275911, %v453_v10  ;;  %v511_v24 = vsub.f32 0.0, %v507_v18  ;;  %v509_v25 = vmul.f32 %v453_v10, %v453_v10 }
 0x104   : > { %1369 = vrcp.f32 %v458_v11  ;;  %v460_v15 = vadd.f32 1.0, %v456_v12  ;;  %v514_v29 = vmul.f32 1.442695, %v510_v20  ;;  %v512_v30 = vsub.f32 0.0, %v508_v21 }
 0x105   : > { %1371 = vrcp.f32 %v459_v13  ;;  %v461_v16 = vadd.f32 1.0, %v457_v14  ;;  %v516_v33 = vmul.f32 1.442695, %v511_v24  ;;  %v513_v36 = vsub.f32 0.0, %v509_v25 }
 0x106   : > { %1373 = vrcp.f32 %v460_v15  ;;  %v518_v41 = vmul.f32 1.442695, %v512_v30 }
 0x107   : > { %1375 = vrcp.f32 %v461_v16  ;;  %v520_v46 = vmul.f32 1.442695, %v513_v36 }
 0x108   : > { %1377 = vpow2.f32 %v514_v29 }
 0x109   : > { %1379 = vpow2.f32 %v516_v33 }
 0x10a   : > { %1381 = vpow2.f32 %v518_v41 }
 0x10b   : > { %1383 = vpow2.f32 %v520_v46  ;;  %v1357_v46 = vld [vmem:[%s1760_s5 + $0x50] sm:$0xff]  }
 0x10e   : > { %v1370_v19 = vpop.eup %1369 }
 0x10f   : > { %v1372_v22 = vpop.eup %1371  ;;  %v470_v23 = vmul.f32 1.0614054, %v1370_v19 }
 0x110   : > { %v471_v26 = vmul.f32 1.0614054, %v1372_v22  ;;  %v1374_v28 = vpop.eup %1373 }
 0x111   : > { %v474_v27 = vadd.f32 -1.4531521, %v470_v23  ;;  %v472_v34 = vmul.f32 1.0614054, %v1374_v28  ;;  %v1376_v35 = vpop.eup %1375 }
 0x112   : > { %v475_v31 = vadd.f32 -1.4531521, %v471_v26  ;;  %v473_v40 = vmul.f32 1.0614054, %v1376_v35  ;;  %v1378_v10 = vpop.eup %1377 }
 0x113   : > { %v478_v32 = vmul.f32 %v1370_v19, %v474_v27  ;;  %v476_v39 = vadd.f32 -1.4531521, %v472_v34  ;;  %v1380_v12 = vpop.eup %1379 }
 0x114   : > { %v479_v37 = vmul.f32 %v1372_v22, %v475_v31  ;;  %v477_v45 = vadd.f32 -1.4531521, %v473_v40  ;;  %v1382_v21 = vpop.eup %1381 }
 0x115   : > { %v482_v38 = vadd.f32 1.4214138, %v478_v32  ;;  %v480_v44 = vmul.f32 %v1374_v28, %v476_v39  ;;  %v1384_v27 = vpop.eup %1383  ;;  %v443_v39 = vmul.f32 0.5, %v1627_v60  ;;  %v1354_v60 = vld [vmem:[%s1760_s5] sm:$0xff]  }
 0x116   : > { %v483_v42 = vadd.f32 1.4214138, %v479_v37  ;;  %v481_v50 = vmul.f32 %v1376_v35, %v477_v45 }
 0x117   : > { %v486_v43 = vmul.f32 %v1370_v19, %v482_v38  ;;  %v484_v49 = vadd.f32 1.4214138, %v480_v44 }
 0x118   : > { %v487_v47 = vmul.f32 %v1372_v22, %v483_v42  ;;  %v485_v57 = vadd.f32 1.4214138, %v481_v50  ;;  %v445_v42 = vmul.f32 0.5, %v1637_v2  ;;  %v1355_v2 = vld [vmem:[%s1760_s5 + $0x48] sm:$0xff]   ;;  %v1361_v50 = vld [vmem:[%s1760_s5 + $0x60] sm:$0xff]  }
 0x119   : > { %v490_v48 = vadd.f32 -0.28449672, %v486_v43  ;;  %v488_v56 = vmul.f32 %v1374_v28, %v484_v49  ;;  %v1360_v49 = vld [vmem:[%s1760_s5 + $0x18] sm:$0xff]  }
 0x11a   : > { %v491_v53 = vadd.f32 -0.28449672, %v487_v47  ;;  %v489_v3 = vmul.f32 %v1376_v35, %v485_v57  ;;  %v1358_v47 = vld [vmem:[%s1760_s5 + $0x10] sm:$0xff]  }
 0x11b   : > { %v494_v55 = vmul.f32 %v1370_v19, %v490_v48  ;;  %v492_v0 = vadd.f32 -0.28449672, %v488_v56  ;;  %v1359_v48 = vld [vmem:[%s1760_s5 + $0x58] sm:$0xff]   ;;  %v1364_v56 = vld [vmem:[%s1760_s5 + $0x28] sm:$0xff]   ;;  %v1365_v57 = vld [vmem:[%s1760_s5 + $0x70] sm:$0xff]  }
 0x11c   : > { %v495_v59 = vmul.f32 %v1372_v22, %v491_v53  ;;  %v493_v9 = vadd.f32 -0.28449672, %v489_v3  ;;  %v1362_v53 = vld [vmem:[%s1760_s5 + $0x20] sm:$0xff]  }
 0x11d   : > { %v498_v61 = vadd.f32 0.2548296, %v494_v55  ;;  %v496_v8 = vmul.f32 %v1374_v28, %v492_v0  ;;  %v1363_v55 = vld [vmem:[%s1760_s5 + $0x68] sm:$0xff]   ;;  %v1368_v0 = vld [vmem:[%s1760_s5 + $0x38] sm:$0xff]   ;;  %v584_v3 = vld [vmem:[%s1759_s4] sm:$0x3] }
 0x11e   : > { %v499_v5 = vadd.f32 0.2548296, %v495_v59  ;;  %v497_v15 = vmul.f32 %v1376_v35, %v493_v9  ;;  %v1366_v59 = vld [vmem:[%s1760_s5 + $0x30] sm:$0xff]  }
 0x11f   : > { %v502_v7 = vmul.f32 %v1370_v19, %v498_v61  ;;  %v500_v14 = vadd.f32 0.2548296, %v496_v8  ;;  %v1367_v61 = vld [vmem:[%s1760_s5 + $0x78] sm:$0xff]  }
 0x120   : > { %v503_v11 = vmul.f32 %v1372_v22, %v499_v5  ;;  %v501_v20 = vadd.f32 0.2548296, %v497_v15  ;;  %v589_v5 = vrot.slane %v584_v3, %v305_v52 }
 0x121   : > { %v522_v13 = vmul.f32 %v1378_v10, %v502_v7  ;;  %v504_v18 = vmul.f32 %v1374_v28, %v500_v14  ;;  %v442_v28 = vmul.f32 0.5, %v1625_v58  ;;  %v593_v7 = vrot.slane %v584_v3, %v309_v54 }
 0x122   : > { %v523_v16 = vmul.f32 %v1380_v12, %v503_v11  ;;  %v505_v26 = vmul.f32 %v1376_v35, %v501_v20  ;;  %v444_v35 = vmul.f32 0.5, %v1632_v63  ;;  %v1353_v63 = vld [vmem:[%s1760_s5 + $0x40] sm:$0xff]  }
 0x123   : > { %v526_v17 = vsub.f32 1.0, %v522_v13  ;;  %v524_v25 = vmul.f32 %v1382_v21, %v504_v18  ;;  %1249 = vmatprep.subr.bf16.mxu0 %v1353_v63 }
 0x124   : > { %v527_v23 = vsub.f32 1.0, %v523_v16  ;;  %v525_v22 = vmul.f32 %v1384_v27, %v505_v26  ;;  %1250 = vmatpush3.bf16.msra.mxu0 %v1354_v60 }
 0x125   : > { %v534_v24 = vsub.f32 0.0, %v526_v17  ;;  %v528_v30 = vsub.f32 1.0, %v524_v25  ;;  %1251 = vmatprep.subr.bf16.mxu0 %v1355_v2 }
 0x126   : > { %v535_v19 = vsub.f32 0.0, %v527_v23  ;;  %v529_v32 = vsub.f32 1.0, %v525_v22 }
 0x127   : > { %v538_v29 = vsel %vm530_vm0, %v534_v24, %v526_v17  ;;  %v536_v31 = vsub.f32 0.0, %v528_v30 }
 0x128   : > { %v539_v33 = vsel %vm531_vm1, %v535_v19, %v527_v23  ;;  %v542_v34 = vadd.f32 1.0, %v538_v29  ;;  %v537_v37 = vsub.f32 0.0, %v529_v32  ;;  %1252 = vmatpush3.bf16.msra.mxu0 %v1356_v6 }
 0x129   : > { %v540_v36 = vsel %vm532_vm2, %v536_v31, %v528_v30  ;;  %v543_v62 = vadd.f32 1.0, %v539_v33  ;;  %1253 = vmatprep.subr.bf16.mxu0 %v1357_v46 }
 0x12a   : > { %v544_v38 = vadd.f32 1.0, %v540_v36  ;;  %v541_v40 = vsel %vm533_vm3, %v537_v37, %v529_v32  ;;  %v546_v1 = vmul.f32 %v542_v34, %v442_v28 }
 0x12b   : > { %v545_v43 = vadd.f32 1.0, %v541_v40  ;;  %v547_v44 = vmul.f32 %v543_v62, %v443_v39 }
 0x12c   : > { %v548_v41 = vmul.f32 %v544_v38, %v444_v35  ;;  %1254 = vmatpush3.bf16.msra.mxu0 %v1358_v47 }
 0x12d   : > { %v549_v4 = vmul.f32 %v545_v43, %v445_v42  ;;  %1255 = vmatprep.subr.bf16.mxu0 %v1359_v48 }
 0x12e   : > { %v550_v45 = vpack.c.bf16 %v548_v41, %v546_v1 }
 0x12f   : > { %v551_v58 = vpack.c.bf16 %v549_v4, %v547_v44 }
 0x130   : > { %1256 = vmatpush3.bf16.msra.mxu0 %v1360_v49 }
 0x131   : > { %788 = vmatprep.mubr.bf16.mxu1 %v551_v58  ;;  %1257 = vmatprep.subr.bf16.mxu0 %v1361_v50 }
 0x132   : > { %789 = vmatmul.mubr.bf16.vlgmr.msra.gmra.mrb[0].mxu1 %v550_v45 }
 0x134   : > { %1258 = vmatpush3.bf16.msra.mxu0 %v1362_v53 }
 0x135   : > { %1259 = vmatprep.subr.bf16.mxu0 %v1363_v55 }
 0x138   : > { %1260 = vmatpush3.bf16.msra.mxu0 %v1364_v56 }
 0x139   : > { %1261 = vmatprep.subr.bf16.mxu0 %v1365_v57 }
 0x13c   : > { %1262 = vmatpush3.bf16.msra.mxu0 %v1366_v59 }
 0x13d   : > { %1263 = vmatprep.subr.bf16.mxu0 %v1367_v61 }
 0x140   : > { %1264 = vmatpush3.bf16.msra.mxu0 %v1368_v0 }
 0x205   : > { %v790_v8 = vpop.f32.mrb[0].mxu1 }
 0x206   : > { %v1712_v9 = vadd.f32 %v790_v8, %v589_v5  ;;  %v792_v10 = vpop.f32.mrb[1].mxu1 }
 0x207   : > { %v1714_v11 = vadd.f32 %v792_v10, %v593_v7  ;;  %v794_v12 = vpop.f32.mrb[2].mxu1 }
 0x208   : > { %v1717_v13 = vmul.f32 0.70710677, %v1712_v9  ;;  %v1719_v14 = vadd.f32 %v794_v12, %v589_v5  ;;  %v796_v15 = vpop.f32.mrb[3].mxu1 }
 0x209   : > { %v1722_v16 = vmul.f32 0.70710677, %v1714_v11  ;;  %v1724_v52 = vadd.f32 %v796_v15, %v593_v7 }
 0x20a   : > { %v807_v51 = vand.u32 2147483647, %v1717_v13  ;;  %v1728_v54 = vmul.f32 0.70710677, %v1719_v14  ;;  %vm887_vm4 = vcmp.lt.f32.partialorder %v1717_v13, 0.0 }
 0x20b   : > { %v808_v17 = vand.u32 2147483647, %v1722_v16  ;;  %v1732_v18 = vmul.f32 0.70710677, %v1724_v52  ;;  %vm888_vm5 = vcmp.lt.f32.partialorder %v1722_v16, 0.0 }
 0x20c   : > { %v811_v20 = vmul.f32 0.3275911, %v807_v51  ;;  %v809_v21 = vand.u32 2147483647, %v1728_v54  ;;  %v863_v22 = vmul.f32 %v807_v51, %v807_v51  ;;  %vm889_vm6 = vcmp.lt.f32.partialorder %v1728_v54, 0.0 }
 0x20d   : > { %v812_v23 = vmul.f32 0.3275911, %v808_v17  ;;  %v810_v24 = vand.u32 2147483647, %v1732_v18  ;;  %v864_v31 = vmul.f32 %v808_v17, %v808_v17  ;;  %vm890_vm7 = vcmp.lt.f32.partialorder %v1732_v18, 0.0 }
 0x20e   : > { %v815_v25 = vadd.f32 1.0, %v811_v20  ;;  %v813_v26 = vmul.f32 0.3275911, %v809_v21  ;;  %v867_v33 = vsub.f32 0.0, %v863_v22  ;;  %v865_v34 = vmul.f32 %v809_v21, %v809_v21 }
 0x20f   : > { %v816_v27 = vadd.f32 1.0, %v812_v23  ;;  %v814_v19 = vmul.f32 0.3275911, %v810_v24  ;;  %v868_v37 = vsub.f32 0.0, %v864_v31  ;;  %v866_v38 = vmul.f32 %v810_v24, %v810_v24 }
 0x210   : > { %1385 = vrcp.f32 %v815_v25  ;;  %v817_v29 = vadd.f32 1.0, %v813_v26  ;;  %v871_v40 = vmul.f32 1.442695, %v867_v33  ;;  %v869_v41 = vsub.f32 0.0, %v865_v34 }
 0x211   : > { %1387 = vrcp.f32 %v816_v27  ;;  %v818_v30 = vadd.f32 1.0, %v814_v19  ;;  %v873_v43 = vmul.f32 1.442695, %v868_v37  ;;  %v870_v58 = vsub.f32 0.0, %v866_v38 }
 0x212   : > { %1389 = vrcp.f32 %v817_v29  ;;  %v875_v46 = vmul.f32 1.442695, %v869_v41 }
 0x213   : > { %1391 = vrcp.f32 %v818_v30  ;;  %v877_v53 = vmul.f32 1.442695, %v870_v58 }
 0x214   : > { %1393 = vpow2.f32 %v871_v40 }
 0x215   : > { %1395 = vpow2.f32 %v873_v43 }
 0x216   : > { %1397 = vpow2.f32 %v875_v46 }
 0x217   : > { %1399 = vpow2.f32 %v877_v53 }
 0x21a   : > { %v1386_v32 = vpop.eup %1385 }
 0x21b   : > { %v1388_v28 = vpop.eup %1387  ;;  %v827_v36 = vmul.f32 1.0614054, %v1386_v32 }
 0x21c   : > { %v828_v35 = vmul.f32 1.0614054, %v1388_v28  ;;  %v1390_v39 = vpop.eup %1389 }
 0x21d   : > { %v831_v62 = vadd.f32 -1.4531521, %v827_v36  ;;  %v829_v44 = vmul.f32 1.0614054, %v1390_v39  ;;  %v1392_v4 = vpop.eup %1391 }
 0x21e   : > { %v832_v1 = vadd.f32 -1.4531521, %v828_v35  ;;  %v830_v2 = vmul.f32 1.0614054, %v1392_v4  ;;  %v1394_v20 = vpop.eup %1393 }
 0x21f   : > { %v835_v42 = vmul.f32 %v1386_v32, %v831_v62  ;;  %v833_v60 = vadd.f32 -1.4531521, %v829_v44  ;;  %v1396_v23 = vpop.eup %1395 }
 0x220   : > { %v836_v45 = vmul.f32 %v1388_v28, %v832_v1  ;;  %v834_v49 = vadd.f32 -1.4531521, %v830_v2  ;;  %v1398_v22 = vpop.eup %1397 }
 0x221   : > { %v839_v63 = vadd.f32 1.4214138, %v835_v42  ;;  %v837_v48 = vmul.f32 %v1390_v39, %v833_v60  ;;  %v1400_v37 = vpop.eup %1399  ;;  %v802_v60 = vmul.f32 0.5, %v1724_v52 }
 0x222   : > { %v840_v6 = vadd.f32 1.4214138, %v836_v45  ;;  %v838_v57 = vmul.f32 %v1392_v4, %v834_v49  ;;  %v800_v45 = vmul.f32 0.5, %v1714_v11 }
 0x223   : > { %v843_v47 = vmul.f32 %v1386_v32, %v839_v63  ;;  %v841_v56 = vadd.f32 1.4214138, %v837_v48 }
 0x224   : > { %v844_v50 = vmul.f32 %v1388_v28, %v840_v6  ;;  %v842_v3 = vadd.f32 1.4214138, %v838_v57 }
 0x225   : > { %v847_v55 = vadd.f32 -0.28449672, %v843_v47  ;;  %v845_v0 = vmul.f32 %v1390_v39, %v841_v56 }
 0x226   : > { %v848_v59 = vadd.f32 -0.28449672, %v844_v50  ;;  %v846_v10 = vmul.f32 %v1392_v4, %v842_v3 }
 0x227   : > { %v851_v61 = vmul.f32 %v1386_v32, %v847_v55  ;;  %v849_v8 = vadd.f32 -0.28449672, %v845_v0 }
 0x228   : > { %v852_v5 = vmul.f32 %v1388_v28, %v848_v59  ;;  %v850_v17 = vadd.f32 -0.28449672, %v846_v10 }
 0x229   : > { %v855_v7 = vadd.f32 0.2548296, %v851_v61  ;;  %v853_v51 = vmul.f32 %v1390_v39, %v849_v8 }
 0x22a   : > { %v856_v12 = vadd.f32 0.2548296, %v852_v5  ;;  %v854_v26 = vmul.f32 %v1392_v4, %v850_v17 }
 0x22b   : > { %v859_v15 = vmul.f32 %v1386_v32, %v855_v7  ;;  %v857_v25 = vadd.f32 0.2548296, %v853_v51 }
 0x22c   : > { %v860_v21 = vmul.f32 %v1388_v28, %v856_v12  ;;  %v858_v30 = vadd.f32 0.2548296, %v854_v26 }
 0x22d   : > { %v879_v24 = vmul.f32 %v1394_v20, %v859_v15  ;;  %v861_v29 = vmul.f32 %v1390_v39, %v857_v25  ;;  %v799_v39 = vmul.f32 0.5, %v1712_v9 }
 0x22e   : > { %v880_v27 = vmul.f32 %v1396_v23, %v860_v21  ;;  %v862_v36 = vmul.f32 %v1392_v4, %v858_v30  ;;  %v801_v4 = vmul.f32 0.5, %v1719_v14  ;;  %v1221_v14 = vld [vmem:[%s1761_s6] ss:$0 sm:$0xff] }
 0x22f   : > { %v883_v19 = vsub.f32 1.0, %v879_v24  ;;  %v881_v34 = vmul.f32 %v1398_v22, %v861_v29 }
 0x230   : > { %v884_v31 = vsub.f32 1.0, %v880_v27  ;;  %v882_v28 = vmul.f32 %v1400_v37, %v862_v36 }
 0x231   : > { %v891_v33 = vsub.f32 0.0, %v883_v19  ;;  %v885_v38 = vsub.f32 1.0, %v881_v34 }
 0x232   : > { %v892_v32 = vsub.f32 0.0, %v884_v31  ;;  %v886_v1 = vsub.f32 1.0, %v882_v28 }
 0x233   : > { %v895_v35 = vsel %vm887_vm4, %v891_v33, %v883_v19  ;;  %v893_v40 = vsub.f32 0.0, %v885_v38 }
 0x234   : > { %v896_v62 = vsel %vm888_vm5, %v892_v32, %v884_v31  ;;  %v899_v41 = vadd.f32 1.0, %v895_v35  ;;  %v894_v43 = vsub.f32 0.0, %v886_v1 }
 0x235   : > { %v897_v42 = vsel %vm889_vm6, %v893_v40, %v885_v38  ;;  %v900_v44 = vadd.f32 1.0, %v896_v62 }
 0x236   : > { %v901_v13 = vadd.f32 1.0, %v897_v42  ;;  %v898_v58 = vsel %vm890_vm7, %v894_v43, %v886_v1  ;;  %v903_v16 = vmul.f32 %v899_v41, %v799_v39 }
 0x237   : > { %v902_v2 = vadd.f32 1.0, %v898_v58  ;;  %v904_v6 = vmul.f32 %v900_v44, %v800_v45 }
 0x238   : > { %v905_v63 = vmul.f32 %v901_v13, %v801_v4 }
 0x239   : > { %v906_v46 = vmul.f32 %v902_v2, %v802_v60 }
 0x23a   : > { %v907_v54 = vpack.c.bf16 %v905_v63, %v903_v16 }
 0x23b   : > { %v908_v9 = vpack.c.bf16 %v906_v46, %v904_v6 }
 0x23d   : > { %1076 = vmatprep.mubr.bf16.mxu0 %v908_v9 }
 0x23e   : > { %1077 = vmatmul.mubr.bf16.vlgmr.msra.gmra.mrb[4].mxu0 %v907_v54 }
 0x311   : > { %v1265_v47 = vpop.f32.mrb[4].mxu0 }
 0x312   : > { %v1266_v48 = vpop.f32.mrb[5].mxu0 }
 0x313   : > { %v1267_v18 = vadd.f32 %v1266_v48, %v1265_v47  ;;  %v1268_v11 = vpop.f32.mrb[6].mxu0 }
 0x314   : > { %v1269_v49 = vpop.f32.mrb[7].mxu0 }
 0x315   : > { %v1270_v50 = vadd.f32 %v1269_v49, %v1268_v11  ;;  %v1079_v53 = vadd.f32 %v1267_v18, %v1221_v14 }
 0x317   : > { %v1082_v52 = vadd.f32 %v1270_v50, %v1221_v14  ;;  %v1085_v55 = vmul.f32 %v1079_v53, %v1079_v53 }
 0x319   : > { %1087 = vadd.xlane.f32.xlu0 %v1085_v55  ;;  %v1086_v56 = vmul.f32 %v1082_v52, %v1082_v52 }
 0x31d   : > { %1089 = vadd.xlane.f32.xlu0 %v1086_v56 }
 0x3a6   : > { %v1088_v57 = vpop.xlane.xlu0 %1087 }
 0x3a7   : > { %v1091_v59 = vmax.f32 %v1088_v57, 1e-24 }
 0x3a9   : > { %1401 = vrsqrt.f32 %v1091_v59 }
 0x3aa   : > { %v1090_v61 = vpop.xlane.xlu0 %1089 }
 0x3ab   : > { %v1092_v0 = vmax.f32 %v1090_v61, 1e-24 }
 0x3ad   : > { %1403 = vrsqrt.f32 %v1092_v0 }
 0x3b3   : > { %v1402_v3 = vpop.eup %1401 }
 0x3b4   : > { %v1095_v7 = vmul.f32 %v1402_v3, %v1079_v53 }
 0x3b7   : > { %v1404_v5 = vpop.eup %1403 }
 0x3b8   : > { %v1096_v8 = vmul.f32 %v1404_v5, %v1082_v52 }
 0x3ba   : > { %v1247_v10 = vpack.c.bf16 %v1096_v8, %v1095_v7 }
 0x3bc   : > { %1248 = vst [vmem:[%s280_s26] sm:$0xff] %v1247_v10  }
 0x3bd PF: > { %s17_s24 = sadd.s32 1, %s1411_s24  }
 0x3be   : > { %p14_p4 = scmp.ge.s32.totalorder %s17_s24, 4  }
 0x3c0   :  { %16 = sbr.rel (!%p14_p4) target bundleno = 1 (0x1), region = 78 }

</bundles_post_ra>
